<compile_context>
chip_gen: v7x
topology: tpu7x:2x2x1
jax: 0.10.0
libtpu: 0.0.40
codegen_flags: <defaults>
</compile_context>

<pallas_src>
import functools

import jax
import jax.numpy as jnp
from jax import lax
from jax.experimental import pallas as pl
from jax.experimental.pallas import tpu as pltpu


def _round_up(n, m):
    return ((n + m - 1) // m) * m


def _encoder_kernel(x_ref, w1_ref, b1_ref, w2_ref, b2_ref, w3_ref, b3_ref, o_ref):
    # x_ref: (block, d_in), batch-major exactly as the caller supplies it (no HBM transpose).
    # All compute is feature-major: h = W @ x^T + b == (x @ W.T + b)^T, so the batch sits on
    # the 128-lane axis and the (d_out, block) output stores are lane-dense (unmasked vst).
    x = x_ref[...]

    # Layer 1: contract W1's in_features dim (1) with x's feature dim (1) -> (hidden, block).
    # MXU matmul, f32 accumulation; no materialized transpose of the x tile.
    h = lax.dot_general(
        w1_ref[...], x, (((1,), (1,)), ((), ())), preferred_element_type=jnp.float32
    )
    h = jnp.maximum(h + b1_ref[...], 0.0)

    # Layer 2: Linear + ReLU.
    h = jnp.dot(w2_ref[...], h.astype(w2_ref.dtype), preferred_element_type=jnp.float32)
    h = jnp.maximum(h + b2_ref[...], 0.0)

    # Layer 3: Linear + Tanh (tanh runs on the EUP).
    h = jnp.dot(w3_ref[...], h.astype(w3_ref.dtype), preferred_element_type=jnp.float32)
    o_ref[...] = jnp.tanh(h + b3_ref[...]).astype(o_ref.dtype)

    # TODO(synk): if vld/vst slots saturate at very large tiles, chunk the lane axis in-kernel
    # (unrolled fori_loop over ~1024-lane slices) to keep activations in vregs.


@functools.partial(jax.jit, static_argnames=("block_b", "compute_dtype"))
def encoder_forward(x, w1, b1, w2, b2, w3, b3, *, block_b=16384,
                    compute_dtype=jnp.float32):
    """x: (B, input_shape) -> (B, lower_shape) float32.

    Weights are in torch layout: w* is (out_features, in_features), b* is (out_features, 1).
    `compute_dtype=jnp.bfloat16` halves the dominant HBM read of the matmul operands;
    accumulation and biases stay float32.
    """
    B, d_in = x.shape
    hidden = w1.shape[0]
    d_out = w3.shape[0]

    # Batch tile: multiple of 128 (lane-dense stores), big enough to amortize per-step
    # pipeline overhead, but capped so the grid keeps >= 2 steps for megacore (v7x: 2 TCs).
    block = min(block_b, _round_up(max(-(-B // 2), 1), 128))
    block = max(block, 128)
    grid = (pl.cdiv(B, block),)  # ragged last block handled by Pallas; no jnp.pad copy of x.

    # Matmul operands in compute_dtype (in production the pipeline would hand us bf16 x
    # directly, avoiding even this cast); biases stay f32.
    xc = x.astype(compute_dtype)
    w1c = w1.astype(compute_dtype)
    w2c = w2.astype(compute_dtype)
    w3c = w3.astype(compute_dtype)

    out_t = pl.pallas_call(
        _encoder_kernel,
        out_shape=jax.ShapeDtypeStruct((d_out, B), jnp.float32),
        grid_spec=pl.GridSpec(
            grid=grid,
            in_specs=[
                pl.BlockSpec((block, d_in), lambda i: (i, 0)),      # x tile, batch-major
                pl.BlockSpec((hidden, d_in), lambda i: (0, 0)),     # W1 (VMEM-resident)
                pl.BlockSpec((hidden, 1), lambda i: (0, 0)),        # b1
                pl.BlockSpec((hidden, hidden), lambda i: (0, 0)),   # W2
                pl.BlockSpec((hidden, 1), lambda i: (0, 0)),        # b2
                pl.BlockSpec((d_out, hidden), lambda i: (0, 0)),    # W3
                pl.BlockSpec((d_out, 1), lambda i: (0, 0)),         # b3
            ],
            out_specs=pl.BlockSpec((d_out, block), lambda i: (0, i)),  # lane-dense output
        ),
        compiler_params=pltpu.CompilerParams(
            dimension_semantics=("parallel",),
            vmem_limit_bytes=32 * 1024 * 1024,
        ),
    )(xc, w1c, b1, w2c, b2, w3c, b3)

    # Only remaining XLA-side hop: the tiny (d_out, B) -> (B, d_out) transpose of the output.
    return out_t.T


def init_params(key, input_shape, lower_shape, hidden=32):
    """Deterministic init mimicking torch.nn.Linear default (uniform +/- 1/sqrt(fan_in)).
    Weights in torch layout (out_features, in_features); biases as (out_features, 1)."""
    ks = jax.random.split(key, 6)

    def lin(kw, kb, fan_in, fan_out):
        bound = 1.0 / jnp.sqrt(fan_in)
        w = jax.random.uniform(kw, (fan_out, fan_in), jnp.float32, -bound, bound)
        b = jax.random.uniform(kb, (fan_out, 1), jnp.float32, -bound, bound)
        return w, b

    w1, b1 = lin(ks[0], ks[1], input_shape, hidden)
    w2, b2 = lin(ks[2], ks[3], hidden, hidden)
    w3, b3 = lin(ks[4], ks[5], hidden, lower_shape)
    return w1, b1, w2, b2, w3, b3


def reference_forward(x, w1, b1, w2, b2, w3, b3):
    h = jnp.maximum(x @ w1.T + b1[:, 0], 0.0)
    h = jnp.maximum(h @ w2.T + b2[:, 0], 0.0)
    return jnp.tanh(h @ w3.T + b3[:, 0])


if __name__ == "__main__":
    input_shape = 16   # nn.Linear(input_shape, 32)
    lower_shape = 8    # nn.Linear(32, lower_shape)
    batch = 300        # not a multiple of 128 -> exercises the ragged-last-block path

    key = jax.random.PRNGKey(0)
    kx, kp = jax.random.split(key)
    x = jax.random.normal(kx, (batch, input_shape), jnp.float32)
    params = init_params(kp, input_shape, lower_shape)

    ref = reference_forward(x, *params)

    # f32 matmul path: matches the pure-JAX reference tightly.
    out = jax.block_until_ready(encoder_forward(x, *params))
    assert out.shape == (batch, lower_shape)
    assert jnp.allclose(out, ref, atol=1e-4, rtol=1e-4), "f32 mismatch vs reference"

    # bf16 matmul path (halved HBM read of x / weights), f32 accumulation -> looser tolerance.
    out_bf16 = jax.block_until_ready(
        encoder_forward(x, *params, compute_dtype=jnp.bfloat16))
    assert out_bf16.shape == (batch, lower_shape)
    assert jnp.allclose(out_bf16, ref, atol=5e-2, rtol=5e-2), "bf16 mismatch vs reference"

    print("KERNEL_OK")
</pallas_src>

<mosaic_0001>
module attributes {stable_mosaic.version = 11 : i64} {
  func.func @_encoder_kernel(%arg0: i32, %arg1: memref<256x16xf32, #tpu.memory_space<vmem>>, %arg2: memref<32x16xf32, #tpu.memory_space<vmem>>, %arg3: memref<32x1xf32, #tpu.memory_space<vmem>>, %arg4: memref<32x32xf32, #tpu.memory_space<vmem>>, %arg5: memref<32x1xf32, #tpu.memory_space<vmem>>, %arg6: memref<8x32xf32, #tpu.memory_space<vmem>>, %arg7: memref<8x1xf32, #tpu.memory_space<vmem>>, %arg8: memref<8x256xf32, #tpu.memory_space<vmem>>) attributes {dimension_semantics = [#tpu.dimension_semantics<parallel>], iteration_bounds = array<i64: 2>, scalar_prefetch = 0 : i64, scratch_operands = 0 : i64, tpu.core_type = #tpu.core_type<tc>, window_params = [{transform_indices = @transform_0, window_bounds = array<i64: 256, 16>}, {pipeline_mode = #tpu.pipeline_mode<synchronous>, transform_indices = @transform_1, window_bounds = array<i64: 32, 16>}, {pipeline_mode = #tpu.pipeline_mode<synchronous>, transform_indices = @transform_2, window_bounds = array<i64: 32, 1>}, {pipeline_mode = #tpu.pipeline_mode<synchronous>, transform_indices = @transform_3, window_bounds = array<i64: 32, 32>}, {pipeline_mode = #tpu.pipeline_mode<synchronous>, transform_indices = @transform_4, window_bounds = array<i64: 32, 1>}, {pipeline_mode = #tpu.pipeline_mode<synchronous>, transform_indices = @transform_5, window_bounds = array<i64: 8, 32>}, {pipeline_mode = #tpu.pipeline_mode<synchronous>, transform_indices = @transform_6, window_bounds = array<i64: 8, 1>}, {transform_indices = @transform_7, window_bounds = array<i64: 8, 256>}]} {
    %c0 = arith.constant 0 : index
    %c0_0 = arith.constant 0 : index
    %0 = vector.load %arg1[%c0, %c0_0] : memref<256x16xf32, #tpu.memory_space<vmem>>, vector<256x16xf32>
    %c0_1 = arith.constant 0 : index
    %c0_2 = arith.constant 0 : index
    %1 = vector.load %arg2[%c0_1, %c0_2] : memref<32x16xf32, #tpu.memory_space<vmem>>, vector<32x16xf32>
    %cst = arith.constant dense<0.000000e+00> : vector<32x256xf32>
    %2 = tpu.matmul %1, %0, %cst {dimension_numbers = #tpu.dot_dimension_numbers<[1], [1], [0], [0], [0, 0, 1, 0], [], []>} : vector<32x16xf32>, vector<256x16xf32>, vector<32x256xf32> -> vector<32x256xf32>
    %c0_3 = arith.constant 0 : index
    %c0_4 = arith.constant 0 : index
    %3 = vector.load %arg3[%c0_3, %c0_4] : memref<32x1xf32, #tpu.memory_space<vmem>>, vector<32x1xf32>
    %4 = vector.broadcast %3 : vector<32x1xf32> to vector<32x256xf32>
    %5 = arith.addf %2, %4 : vector<32x256xf32>
    %cst_5 = arith.constant 0.000000e+00 : f32
    %6 = vector.broadcast %cst_5 : f32 to vector<32x256xf32>
    %7 = arith.maximumf %5, %6 : vector<32x256xf32>
    %c0_6 = arith.constant 0 : index
    %c0_7 = arith.constant 0 : index
    %8 = vector.load %arg4[%c0_6, %c0_7] : memref<32x32xf32, #tpu.memory_space<vmem>>, vector<32x32xf32>
    %cst_8 = arith.constant dense<0.000000e+00> : vector<32x256xf32>
    %9 = tpu.matmul %8, %7, %cst_8 {dimension_numbers = #tpu.dot_dimension_numbers<[1], [0], [0], [1], [0, 0, 1, 1], [], []>} : vector<32x32xf32>, vector<32x256xf32>, vector<32x256xf32> -> vector<32x256xf32>
    %c0_9 = arith.constant 0 : index
    %c0_10 = arith.constant 0 : index
    %10 = vector.load %arg5[%c0_9, %c0_10] : memref<32x1xf32, #tpu.memory_space<vmem>>, vector<32x1xf32>
    %11 = vector.broadcast %10 : vector<32x1xf32> to vector<32x256xf32>
    %12 = arith.addf %9, %11 : vector<32x256xf32>
    %cst_11 = arith.constant 0.000000e+00 : f32
    %13 = vector.broadcast %cst_11 : f32 to vector<32x256xf32>
    %14 = arith.maximumf %12, %13 : vector<32x256xf32>
    %c0_12 = arith.constant 0 : index
    %c0_13 = arith.constant 0 : index
    %15 = vector.load %arg6[%c0_12, %c0_13] : memref<8x32xf32, #tpu.memory_space<vmem>>, vector<8x32xf32>
    %cst_14 = arith.constant dense<0.000000e+00> : vector<8x256xf32>
    %16 = tpu.matmul %15, %14, %cst_14 {dimension_numbers = #tpu.dot_dimension_numbers<[1], [0], [0], [1], [0, 0, 1, 1], [], []>} : vector<8x32xf32>, vector<32x256xf32>, vector<8x256xf32> -> vector<8x256xf32>
    %c0_15 = arith.constant 0 : index
    %c0_16 = arith.constant 0 : index
    %17 = vector.load %arg7[%c0_15, %c0_16] : memref<8x1xf32, #tpu.memory_space<vmem>>, vector<8x1xf32>
    %18 = vector.broadcast %17 : vector<8x1xf32> to vector<8x256xf32>
    %19 = arith.addf %16, %18 : vector<8x256xf32>
    %20 = math.tanh %19 : vector<8x256xf32>
    %c0_17 = arith.constant 0 : index
    %c0_18 = arith.constant 0 : index
    %21 = vector.load %arg8[%c0_17, %c0_18] : memref<8x256xf32, #tpu.memory_space<vmem>>, vector<8x256xf32>
    tpu.vector_store %arg8[%c0_17, %c0_18], %20 {strides = array<i32>} : memref<8x256xf32, #tpu.memory_space<vmem>>, vector<8x256xf32>,
    return
  }
  func.func @transform_0(%arg0: i32) -> (i32, i32) {
    %c0_i32 = arith.constant 0 : i32
    %c0_i32_0 = arith.constant 0 : i32
    return %arg0, %c0_i32 : i32, i32
  }
  func.func @transform_1(%arg0: i32) -> (i32, i32) {
    %c0_i32 = arith.constant 0 : i32
    %c0_i32_0 = arith.constant 0 : i32
    %c0_i32_1 = arith.constant 0 : i32
    return %c0_i32, %c0_i32_0 : i32, i32
  }
  func.func @transform_2(%arg0: i32) -> (i32, i32) {
    %c0_i32 = arith.constant 0 : i32
    %c0_i32_0 = arith.constant 0 : i32
    %c0_i32_1 = arith.constant 0 : i32
    return %c0_i32, %c0_i32_0 : i32, i32
  }
  func.func @transform_3(%arg0: i32) -> (i32, i32) {
    %c0_i32 = arith.constant 0 : i32
    %c0_i32_0 = arith.constant 0 : i32
    %c0_i32_1 = arith.constant 0 : i32
    return %c0_i32, %c0_i32_0 : i32, i32
  }
  func.func @transform_4(%arg0: i32) -> (i32, i32) {
    %c0_i32 = arith.constant 0 : i32
    %c0_i32_0 = arith.constant 0 : i32
    %c0_i32_1 = arith.constant 0 : i32
    return %c0_i32, %c0_i32_0 : i32, i32
  }
  func.func @transform_5(%arg0: i32) -> (i32, i32) {
    %c0_i32 = arith.constant 0 : i32
    %c0_i32_0 = arith.constant 0 : i32
    %c0_i32_1 = arith.constant 0 : i32
    return %c0_i32, %c0_i32_0 : i32, i32
  }
  func.func @transform_6(%arg0: i32) -> (i32, i32) {
    %c0_i32 = arith.constant 0 : i32
    %c0_i32_0 = arith.constant 0 : i32
    %c0_i32_1 = arith.constant 0 : i32
    return %c0_i32, %c0_i32_0 : i32, i32
  }
  func.func @transform_7(%arg0: i32) -> (i32, i32) {
    %c0_i32 = arith.constant 0 : i32
    %c0_i32_0 = arith.constant 0 : i32
    return %c0_i32, %arg0 : i32, i32
  }
}

</mosaic_0001>

<bundles_post_ra>
// kernel: encoder_forward.1
= control target key start
LH: loop header
LB: loop body
LE: loop exit
PB: predicated region body
PF: predicated region fallthrough
CT: control target
= control target key end

     0   :  { %12 = vsyncpa [#allocation3], 0  ;;  %s1438_s0 = inlined_call_operand.vmem [shape: f32[300,16], index: 0, kind: input, shape index: {}]   ;;  %s1439_s1 = inlined_call_operand.vmem [shape: f32[32,16], index: 1, kind: input, shape index: {}]   ;;  %s1440_s2 = inlined_call_operand.vmem [shape: f32[32,1], index: 2, kind: input, shape index: {}]   ;;  %s1441_s3 = inlined_call_operand.vmem [shape: f32[32,32], index: 3, kind: input, shape index: {}]   ;;  %s1442_s4 = inlined_call_operand.vmem [shape: f32[32,1], index: 4, kind: input, shape index: {}]   ;;  %s1443_s5 = inlined_call_operand.vmem [shape: f32[8,32], index: 5, kind: input, shape index: {}]   ;;  %s1444_s6 = inlined_call_operand.vmem [shape: f32[8,1], index: 6, kind: input, shape index: {}]   ;;  %s1445_s7 = inlined_call_operand.hbm [shape: f32[8,300], index: 7, kind: output, shape index: {}]  }
   0x1   :  { %14 = vsyncpa [#allocation3 + $0x1], 0  ;;  %s1188_s24 = smov 0   ;;  %s1190_s25 = smov 0  }
   0x2   :  { %s1192_s26 = smov 0   ;;  %s1194_s27 = smov 0  }
   0x3 LB: > { %s1209_s28 = sadd.s32 4294967295, %s1143_s27   ;;  %s873_s29 = sadd.s32 4294967294, %s1143_s27   ;;  %s1143_s27 = sphi %s1194_s27, %s1453_s27   ;;  %s1139_s26 = sphi %s1192_s26, %s1452_s26   ;;  %s1135_s25 = sphi %s1190_s25, %s1451_s25   ;;  %s1131_s24 = sphi %s1188_s24, %s1450_s24  }
   0x4   : > { %s1213_s30 = sadd.s32 1, %s1143_s27   ;;  %s179_s8 = sadd.s32 1, %s1139_s26 }
   0x5   : > { %s176_s9 = ssub.s32 %s1143_s27, %s1213_s30  ;;  %p189_p0 = scmp.ne.s32.totalorder %s1139_s26, %s1135_s25 }
   0x6   : > { %p177_p1 = scmp.eq.s32.totalorder %s176_s9, 0  ;;  %p190_p2 = scmp.eq.s32.totalorder %s1209_s28, 1 }
   0x7   : > { %p195_p3 = scmp.ne.s32.totalorder %s1135_s25, %s1131_s24  ;;  %p196_p4 = scmp.eq.s32.totalorder %s873_s29, 1 }
   0x8   : > { %s1224_s10 = scalar_select %p177_p1, %s1139_s26, %s179_s8  }
   0x9   : > { %p1226_p5 = por %p190_p2, %p189_p0  ;;  %p1230_p6 = por %p196_p4, %p195_p3 }
   0xa   : > { %p876_p7 = scmp.ge.s32.totalorder %s1143_s27, 1  ;;  %p249_p8 = scmp.lt.s32.totalorder %s1143_s27, 3 }
   0xc   : > { %p250_p9 = pnand %p876_p7, %p249_p8 }
   0xd   : > { %s878_s13 = sshll.u32 (!%p250_p9), %s1209_s28, 5  ;;  %vm364_vm0 = vcmask (!%p250_p9), 130048   ;;  %v1240_v0 = vld [vmem:[%s1439_s1] sm:$0xff] (!%p250_p9)  ;;  %v1145_v1 = vmov (!%p250_p9), 0   ;;  %v342_v3 = vld [vmem:[%s1440_s2 + $0x10] sm:$0xff] (!%p250_p9)  ;;  %v341_v4 = vld [vmem:[%s1440_s2 + $0x8] sm:$0xff] (!%p250_p9) }
   0xe   : > { %253 = sbr.rel (%p250_p9) target bundleno = 815 (0x32f), region = 48  ;;  %p290_p10 = scmp.lt.s32.totalorder (!%p250_p9), %s878_s13, 37  ;;  %963 = vmatprep.mubr.msk.f32.mxu0 (!%p250_p9), %vm364_vm0, %v1240_v0  ;;  %1075 = vset.pattern.permute.xlu0 (!%p250_p9), %v1145_v1  ;;  %v340_v2 = vld [vmem:[%s1440_s2] sm:$0xff] (!%p250_p9)  ;;  %v343_v5 = vld [vmem:[%s1440_s2 + $0x18] sm:$0xff] (!%p250_p9)  ;;  %vm1263_vm1 = vmpackc.low (!%p250_p9), %vm364_vm0, %vm364_vm0  ;;  %v1146_v63 = vmov (!%p250_p9), 0.0   ;;  %vm598_vm2 = vcmask (!%p250_p9), 261120  }
   0xf   : > { %346 = vperm.xlu0 (!%p250_p9), %1075, %v340_v2   ;;  %1076 = vset.pattern.permute.xlu1 (!%p250_p9), %v1145_v1  ;;  %v574_v7 = vld [vmem:[%s1442_s4] sm:$0xff] (!%p250_p9)  ;;  %v575_v8 = vld [vmem:[%s1442_s4 + $0x8] sm:$0xff] (!%p250_p9)  ;;  %v576_v18 = vld [vmem:[%s1442_s4 + $0x10] sm:$0xff] (!%p250_p9)  ;;  %s282_s9 = sand.u32 (!%p250_p9), 1, %s1135_s25  }
  0x10   : > { %356 = vperm.xlu1 (!%p250_p9), %1076, %v342_v3   ;;  %v577_v21 = vld [vmem:[%s1442_s4 + $0x18] sm:$0xff] (!%p250_p9)  ;;  %v709_v25 = vld [vmem:[%s1444_s6] sm:$0xff] (!%p250_p9)  ;;  %v337_v60 = vld [vmem:[%s1439_s1 + $0x8] sm:$0xff] (!%p250_p9)  ;;  %675 = vmatprep.mubr.f32.mxu1 (!%p250_p9), %v1146_v63  ;;  %s877_s15 = sshll.u32 (!%p250_p9), %s282_s9, 4 }
  0x11   : > { %v338_v61 = vld [vmem:[%s1439_s1 + $0x10] sm:$0xff] (!%p250_p9)  ;;  %v339_v62 = vld [vmem:[%s1439_s1 + $0x18] sm:$0xff] (!%p250_p9) }
  0x13   : > { %351 = vperm.xlu0 (!%p250_p9), %1075, %v341_v4  }
  0x14   : > { %361 = vperm.xlu1 (!%p250_p9), %1076, %v343_v5  }
  0x15   : > { %s1455_s13 = smov (!%p290_p10, %s878_s13), 37  ;;  %s922_s16 = sshll.u32 (%p1226_p5), %s1209_s28, 1 }
  0x16   : > { %s879_s29 = sshll.u32 %s1455_s13, 3  ;;  %s1384_s13 = scalar_lea.sflag [#allocation3], %s282_s9 }
  0x17   : > { %s1259_s14 = scalar_lea.vmem %s1438_s0, %s879_s29  ;;  %580 = vperm.xlu0 %1075, %v574_v7   ;;  %s802_s17 = ssub.s32 (%p1226_p5), 3, %s922_s16 }
  0x18   : > { %v320_v9 = vld [vmem:[%s1259_s14 + $0x80] sm:$0xff]  ;;  %v321_v10 = vld [vmem:[%s1259_s14 + $0x88] sm:$0xff]  ;;  %v322_v14 = vld [vmem:[%s1259_s14 + $0x90] sm:$0xff]  ;;  %585 = vperm.xlu1 %1076, %v575_v8   ;;  %p803_p11 = scmp.lt.s32.totalorder (%p1226_p5), %s802_s17, 2 }
  0x19   : > { %v304_v11 = vld [vmem:[%s1259_s14] sm:$0xff]  ;;  %v971_v12 = vpack.c.bf16 %v321_v10, %v320_v9  ;;  %v305_v13 = vld [vmem:[%s1259_s14 + $0x8] sm:$0xff]  ;;  %v323_v15 = vld [vmem:[%s1259_s14 + $0x98] sm:$0xff] }
  0x1a   : > { %v974_v16 = vpack.c.bf16 %v305_v13, %v304_v11  ;;  %v977_v17 = vpack.c.bf16 %v323_v15, %v322_v14  ;;  %v306_v19 = vld [vmem:[%s1259_s14 + $0x10] sm:$0xff]  ;;  %v307_v20 = vld [vmem:[%s1259_s14 + $0x18] sm:$0xff]  ;;  %v324_v22 = vld [vmem:[%s1259_s14 + $0xa0] sm:$0xff] }
  0x1b   : > { %973 = vmatprep.subr.msk.bf16.mxu0 %vm1263_vm1, %v971_v12  ;;  %v325_v23 = vld [vmem:[%s1259_s14 + $0xa8] sm:$0xff]  ;;  %590 = vperm.xlu0 %1075, %v576_v18   ;;  %v980_v24 = vpack.c.bf16 %v307_v20, %v306_v19  ;;  %v308_v27 = vld [vmem:[%s1259_s14 + $0x20] sm:$0xff]  ;;  %v326_v29 = vld [vmem:[%s1259_s14 + $0xb0] sm:$0xff] }
  0x1c   : > { %976 = vmatpush3.bf16.xpose.msk.msra.mxu0 %vm1263_vm1, %v974_v16  ;;  %595 = vperm.xlu1 %1076, %v577_v21   ;;  %v983_v26 = vpack.c.bf16 %v325_v23, %v324_v22  ;;  %v309_v28 = vld [vmem:[%s1259_s14 + $0x28] sm:$0xff]  ;;  %v327_v30 = vld [vmem:[%s1259_s14 + $0xb8] sm:$0xff]  ;;  %v310_v33 = vld [vmem:[%s1259_s14 + $0x30] sm:$0xff] }
  0x1d   : > { %979 = vmatprep.subr.msk.bf16.mxu0 %vm1263_vm1, %v977_v17  ;;  %v986_v31 = vpack.c.bf16 %v309_v28, %v308_v27  ;;  %v989_v32 = vpack.c.bf16 %v327_v30, %v326_v29  ;;  %v311_v34 = vld [vmem:[%s1259_s14 + $0x38] sm:$0xff]  ;;  %v328_v35 = vld [vmem:[%s1259_s14 + $0xc0] sm:$0xff]  ;;  %v329_v36 = vld [vmem:[%s1259_s14 + $0xc8] sm:$0xff] }
  0x1e   : > { %v992_v37 = vpack.c.bf16 %v311_v34, %v310_v33  ;;  %v995_v38 = vpack.c.bf16 %v329_v36, %v328_v35  ;;  %v312_v39 = vld [vmem:[%s1259_s14 + $0x40] sm:$0xff]  ;;  %v313_v40 = vld [vmem:[%s1259_s14 + $0x48] sm:$0xff]  ;;  %v330_v41 = vld [vmem:[%s1259_s14 + $0xd0] sm:$0xff] }
  0x1f   : > { %712 = vperm.xlu0 %1075, %v709_v25   ;;  %v331_v42 = vld [vmem:[%s1259_s14 + $0xd8] sm:$0xff]  ;;  %v998_v43 = vpack.c.bf16 %v313_v40, %v312_v39  ;;  %v314_v45 = vld [vmem:[%s1259_s14 + $0x50] sm:$0xff]  ;;  %v332_v47 = vld [vmem:[%s1259_s14 + $0xe0] sm:$0xff] }
  0x20   : > { %v1001_v44 = vpack.c.bf16 %v331_v42, %v330_v41  ;;  %v315_v46 = vld [vmem:[%s1259_s14 + $0x58] sm:$0xff]  ;;  %v333_v48 = vld [vmem:[%s1259_s14 + $0xe8] sm:$0xff]  ;;  %v316_v51 = vld [vmem:[%s1259_s14 + $0x60] sm:$0xff] }
  0x21   : > { %v1004_v49 = vpack.c.bf16 %v315_v46, %v314_v45  ;;  %v1007_v50 = vpack.c.bf16 %v333_v48, %v332_v47  ;;  %v317_v52 = vld [vmem:[%s1259_s14 + $0x68] sm:$0xff]  ;;  %v334_v53 = vld [vmem:[%s1259_s14 + $0xf0] sm:$0xff]  ;;  %v335_v54 = vld [vmem:[%s1259_s14 + $0xf8] sm:$0xff] }
  0x22   : > { %v1010_v55 = vpack.c.bf16 %v317_v52, %v316_v51  ;;  %v1013_v56 = vpack.c.bf16 %v335_v54, %v334_v53  ;;  %v318_v57 = vld [vmem:[%s1259_s14 + $0x70] sm:$0xff]  ;;  %v319_v58 = vld [vmem:[%s1259_s14 + $0x78] sm:$0xff]  ;;  %v571_v33 = vld [vmem:[%s1441_s3 + $0x8] sm:$0xff]  ;;  %s284_s14 = scalar_lea.vmem [#allocation2], %s877_s15 }
  0x23   : > { %v1016_v59 = vpack.c.bf16 %v319_v58, %v318_v57  ;;  %v572_v34 = vld [vmem:[%s1441_s3 + $0x10] sm:$0xff]  ;;  %v573_v35 = vld [vmem:[%s1441_s3 + $0x18] sm:$0xff] }
  0x24   : > { %982 = vmatpush3.bf16.xpose.msk.msra.mxu0 %vm1263_vm1, %v980_v24 }
  0x25   : > { %985 = vmatprep.subr.msk.bf16.mxu0 %vm1263_vm1, %v983_v26 }
  0x2c   : > { %988 = vmatpush3.bf16.xpose.msk.msra.mxu0 %vm1263_vm1, %v986_v31 }
  0x2d   : > { %991 = vmatprep.subr.msk.bf16.mxu0 %vm1263_vm1, %v989_v32  ;;  %v570_v32 = vld [vmem:[%s1441_s3] sm:$0xff] }
  0x34   : > { %994 = vmatpush3.bf16.xpose.msk.msra.mxu0 %vm1263_vm1, %v992_v37 }
  0x35   : > { %997 = vmatprep.subr.msk.bf16.mxu0 %vm1263_vm1, %v995_v38 }
  0x3c   : > { %1000 = vmatpush3.bf16.xpose.msk.msra.mxu0 %vm1263_vm1, %v998_v43 }
  0x3d   : > { %1003 = vmatprep.subr.msk.bf16.mxu0 %vm1263_vm1, %v1001_v44 }
  0x44   : > { %1006 = vmatpush3.bf16.xpose.msk.msra.mxu0 %vm1263_vm1, %v1004_v49 }
  0x45   : > { %1009 = vmatprep.subr.msk.bf16.mxu0 %vm1263_vm1, %v1007_v50 }
  0x4c   : > { %1012 = vmatpush3.bf16.xpose.msk.msra.mxu0 %vm1263_vm1, %v1010_v55 }
  0x4d   : > { %1015 = vmatprep.subr.msk.bf16.mxu0 %vm1263_vm1, %v1013_v56 }
  0x54   : > { %1018 = vmatpush3.bf16.xpose.msk.msra.mxu0 %vm1263_vm1, %v1016_v59 }
  0x5b   : > { %964 = vmatmul.mubr.msk.f32.vlgmr.msra.gmra.mrb[0].mxu0 %vm364_vm0, %v1240_v0 }
  0x5c   : > { %965 = vmatprep.mubr.msk.f32.mxu0 %vm364_vm0, %v337_v60 }
  0x5f   : > { %966 = vmatmul.mubr.msk.f32.gmra.mrb[2].mxu0 %vm364_vm0, %v337_v60 }
  0x60   : > { %967 = vmatprep.mubr.msk.f32.mxu0 %vm364_vm0, %v338_v61 }
  0x63   : > { %968 = vmatmul.mubr.msk.f32.gmra.mrb[4].mxu0 %vm364_vm0, %v338_v61 }
  0x64   : > { %969 = vmatprep.mubr.msk.f32.mxu0 %vm364_vm0, %v339_v62 }
  0x67   : > { %970 = vmatmul.mubr.msk.f32.gmra.mrb[6].mxu0 %vm364_vm0, %v339_v62 }
  0x8e   : > { %v347_v0 = vpop.permute.xlu0 %346 }
  0x8f   : > { %v357_v9 = vpop.permute.xlu1 %356 }
  0x92   : > { %v352_v4 = vpop.permute.xlu0 %351 }
  0x93   : > { %v362_v20 = vpop.permute.xlu1 %361 }
  0x96   : > { %v581_v38 = vpop.permute.xlu0 %580 }
  0x97   : > { %v586_v40 = vpop.permute.xlu1 %585 }
  0x9a   : > { %v591_v53 = vpop.permute.xlu0 %590 }
  0x9b   : > { %v596_v56 = vpop.permute.xlu1 %595 }
 0x12e   : > { %v539_v1 = vpop.f32.mrb[0].mxu0 }
 0x12f   : > { %v541_v2 = vpop.f32.mrb[1].mxu0  ;;  %v540_v3 = vadd.f32 %v539_v1, %v347_v0 }
 0x130   : > { %v542_v5 = vadd.f32 %v541_v2, %v347_v0 }
 0x131   : > { %v562_v11 = vmax.f32 %v540_v3, 0.0 }
 0x132   : > { %v545_v6 = vpop.f32.mrb[2].mxu0  ;;  %v563_v13 = vmax.f32 %v542_v5, 0.0  ;;  %v713_v5 = vpop.permute.xlu0 %712 }
 0x133   : > { %v546_v7 = vadd.f32 %v545_v6, %v352_v4  ;;  %v547_v8 = vpop.f32.mrb[3].mxu0 }
 0x134   : > { %v548_v10 = vadd.f32 %v547_v8, %v352_v4  ;;  %v708_v4 = vld [vmem:[%s1443_s5] sm:$0xff] }
 0x135   : > { %v564_v12 = vmax.f32 %v546_v7, 0.0 }
 0x136   : > { %v565_v14 = vmax.f32 %v548_v10, 0.0  ;;  %v551_v15 = vpop.f32.mrb[4].mxu0 }
 0x137   : > { %v553_v16 = vpop.f32.mrb[5].mxu0  ;;  %v1021_v17 = vpack.c.bf16 %v564_v12, %v562_v11  ;;  %v552_v19 = vadd.f32 %v551_v15, %v357_v9 }
 0x138   : > { %v1019_v18 = vpack.c.bf16 %v565_v14, %v563_v13  ;;  %v554_v21 = vadd.f32 %v553_v16, %v357_v9 }
 0x139   : > { %v566_v26 = vmax.f32 %v552_v19, 0.0 }
 0x13a   : > { %v557_v22 = vpop.f32.mrb[6].mxu0  ;;  %1020 = vmatprep.subr.bf16.mxu1 %v1019_v18  ;;  %v567_v28 = vmax.f32 %v554_v21, 0.0 }
 0x13b   : > { %v558_v23 = vadd.f32 %v557_v22, %v362_v20  ;;  %v559_v24 = vpop.f32.mrb[7].mxu0  ;;  %1022 = vmatpush1.bf16.msra.mxu1 %v1021_v17 }
 0x13c   : > { %v560_v25 = vadd.f32 %v559_v24, %v362_v20 }
 0x13d   : > { %v568_v27 = vmax.f32 %v558_v23, 0.0 }
 0x13e   : > { %v569_v29 = vmax.f32 %v560_v25, 0.0 }
 0x13f   : > { %v1025_v30 = vpack.c.bf16 %v568_v27, %v566_v26 }
 0x140   : > { %v1023_v31 = vpack.c.bf16 %v569_v29, %v567_v28 }
 0x142   : > { %1024 = vmatprep.subr.bf16.mxu1 %v1023_v31 }
 0x143   : > { %1026 = vmatpush1.bf16.msra.mxu1 %v1025_v30 }
 0x146   : > { %916 = vmatmul.mubr.msk.f32.vlgmr.msra.gmra.mrb[0].mxu1 %vm598_vm2, %v570_v32 }
 0x147   : > { %681 = vmatprep.mubr.f32.mxu1 %v1146_v63 }
 0x14a   : > { %917 = vmatmul.mubr.msk.f32.gmra.mrb[2].mxu1 %vm598_vm2, %v571_v33 }
 0x14b   : > { %687 = vmatprep.mubr.f32.mxu1 %v1146_v63 }
 0x14e   : > { %918 = vmatmul.mubr.msk.f32.gmra.mrb[4].mxu1 %vm598_vm2, %v572_v34 }
 0x14f   : > { %693 = vmatprep.mubr.f32.mxu1 %v1146_v63 }
 0x152   : > { %919 = vmatmul.mubr.msk.f32.gmra.mrb[6].mxu1 %vm598_vm2, %v573_v35 }
 0x153   : > { %782 = vmatprep.mubr.f32.mxu1 %v1146_v63 }
 0x219   : > { %v677_v36 = vpop.f32.mrb[0].mxu1 }
 0x21a   : > { %v679_v37 = vpop.f32.mrb[1].mxu1  ;;  %v678_v39 = vadd.f32 %v677_v36, %v581_v38 }
 0x21b   : > { %v680_v41 = vadd.f32 %v679_v37, %v581_v38 }
 0x21c   : > { %v700_v46 = vmax.f32 %v678_v39, 0.0 }
 0x21d   : > { %v683_v42 = vpop.f32.mrb[2].mxu1  ;;  %v701_v48 = vmax.f32 %v680_v41, 0.0 }
 0x21e   : > { %v684_v43 = vadd.f32 %v683_v42, %v586_v40  ;;  %v685_v44 = vpop.f32.mrb[3].mxu1 }
 0x21f   : > { %v686_v45 = vadd.f32 %v685_v44, %v586_v40 }
 0x220   : > { %v702_v47 = vmax.f32 %v684_v43, 0.0 }
 0x221   : > { %v703_v49 = vmax.f32 %v686_v45, 0.0  ;;  %v689_v50 = vpop.f32.mrb[4].mxu1 }
 0x222   : > { %v1029_v51 = vpack.c.bf16 %v702_v47, %v700_v46  ;;  %v691_v52 = vpop.f32.mrb[5].mxu1  ;;  %v690_v55 = vadd.f32 %v689_v50, %v591_v53 }
 0x223   : > { %v1027_v54 = vpack.c.bf16 %v703_v49, %v701_v48  ;;  %v692_v57 = vadd.f32 %v691_v52, %v591_v53 }
 0x224   : > { %v704_v62 = vmax.f32 %v690_v55, 0.0 }
 0x225   : > { %v695_v58 = vpop.f32.mrb[6].mxu1  ;;  %1028 = vmatprep.subr.bf16.mxu1 %v1027_v54  ;;  %v705_v0 = vmax.f32 %v692_v57, 0.0 }
 0x226   : > { %v696_v59 = vadd.f32 %v695_v58, %v596_v56  ;;  %v697_v60 = vpop.f32.mrb[7].mxu1  ;;  %1030 = vmatpush1.bf16.msra.mxu1 %v1029_v51 }
 0x227   : > { %v698_v61 = vadd.f32 %v697_v60, %v596_v56 }
 0x228   : > { %v706_v63 = vmax.f32 %v696_v59, 0.0 }
 0x229   : > { %v707_v1 = vmax.f32 %v698_v61, 0.0 }
 0x22a   : > { %v1033_v2 = vpack.c.bf16 %v706_v63, %v704_v62 }
 0x22b   : > { %v1031_v3 = vpack.c.bf16 %v707_v1, %v705_v0 }
 0x22d   : > { %1032 = vmatprep.subr.bf16.mxu1 %v1031_v3 }
 0x22e   : > { %1034 = vmatpush1.bf16.msra.mxu1 %v1033_v2 }
 0x231   : > { %920 = vmatmul.mubr.msk.f32.vlgmr.msra.gmra.mrb[8].mxu1 %vm598_vm2, %v708_v4 }
 0x304   : > { %v784_v6 = vpop.f32.mrb[8].mxu1 }
 0x305   : > { %v785_v7 = vadd.f32 %v784_v6, %v713_v5  ;;  %v786_v8 = vpop.f32.mrb[9].mxu1 }
 0x306   : > { %v787_v9 = vadd.f32 %v786_v8, %v713_v5 }
 0x307   : > { %1077 = vtanh.f32 %v785_v7 }
 0x308   : > { %1079 = vtanh.f32 %v787_v9 }
 0x30d   : > { %800 = sbr.rel (!%p1226_p5) target bundleno = 815 (0x32f), region = 52 }
 0x311   : > { %v1078_v10 = vpop.eup %1077 }
 0x312   : > { %v1080_v11 = vpop.eup %1079  ;;  %791 = vst [vmem:[%s284_s14] sm:$0xff] %v1078_v10 }
 0x313   : > { %792 = vst [vmem:[%s284_s14 + $0x8] sm:$0xff] %v1080_v11 }
 0x314   : > { %s1457_s17 = smov (!%p803_p11, %s802_s17), 2 }
 0x315   : > { %s1389_s18 = sshll.u32 %s1457_s17, 7 }
 0x316   : > { %s807_s19 = ssub.s32 256, %s1389_s18 }
 0x317   : > { %808 = vsyncadd %s1384_s13, %s807_s19  ;;  %p924_p12 = scmp.ne.s32.totalorder %s1389_s18, 0  ;;  %s930_s20 = sshll.u32 %s1209_s28, 8 }
 0x318   : > { %s1398_s22 = scalar_lea.hbm %s1445_s7, %s930_s20  ;;  %s814_s23 = sshll.u32 %s284_s14, 4  ;;  %s815_s23 = int_to_ptr.vmem [resolvable:$true] %s814_s23 }
 0x319   : > { %s1081_s29 = scalar_lea.vmem %s815_s23, %s1389_s18  ;;  %s1147_s8 = smov [#allocation2]  }
 0x31a   : > { %p1082_p13 = scmp.ne.s32.totalorder %s815_s23, %s1081_s29  ;;  %s1085_s9 = sshll.u32 %s1147_s8, 4  ;;  %s1086_s9 = int_to_ptr.vmem [resolvable:$false] %s1085_s9 }
 0x31b   : > { %s1087_s15 = scalar_lea.vmem %s1086_s9, 512  ;;  %p1088_p2 = scmp.lt.s32.totalorder %s815_s23, %s1086_s9 }
 0x31c   : > { %p1083_p0 = pnand %p1082_p13, %p924_p12  ;;  %p1089_p3 = scmp.lt.s32.totalorder %s1087_s15, %s1081_s29 }
 0x31e   : > { %p1084_p1 = pneg %p1083_p0  ;;  %p1090_p4 = por %p1089_p3, %p1088_p2 }
 0x320   : > { %p1091_p5 = pnand %p1090_p4, %p1084_p1 }
 0x322   : > { %1094 = shalt.err (!%p1091_p5)
}
 0x323   : > { %s1095_s28 = scalar_lea.hbm %s1398_s22, %s1389_s18  ;;  %s1099_s17 = scalar_lea.hbm %s1445_s7, 384 }
 0x324   : > { %p1096_p7 = scmp.ne.s32.totalorder %s1398_s22, %s1095_s28  ;;  %p1100_p10 = scmp.lt.u32.totalorder %s1398_s22, %s1445_s7 }
 0x325   : > { %p1101_p11 = scmp.lt.u32.totalorder %s1099_s17, %s1095_s28  ;;  %p1103_p0 = scmp.lt.u32.totalorder %s1095_s28, %s1398_s22 }
 0x326   : > { %p1097_p8 = pnand %p1096_p7, %p924_p12 }
 0x327   : > { %p1102_p13 = por %p1101_p11, %p1100_p10 }
 0x328   : > { %p1098_p9 = pneg %p1097_p8 }
 0x329   : > { %p1104_p1 = por %p1103_p0, %p1102_p13 }
 0x32b   : > { %p1105_p2 = pnand %p1104_p1, %p1098_p9 }
 0x32d   : > { %1108 = shalt.err (!%p1105_p2)
}
 0x32e   : > { %817 = dma.vmem_to_hbm [thread:$0]  (%p924_p12), %s815_s23, %s1389_s18, %s1398_s22, %s1384_s13  }
 0x32f PF: > { %p1040_p3 = scmp.ge.s32.totalorder %s1143_s27, 2  ;;  %s826_s21 = sand.u32 1, %s1131_s24  }
 0x330   : > { %s827_s11 = scalar_lea.sflag [#allocation3], %s826_s21 }
 0x331   : > { %p1037_p4 = pnand %p1040_p3, %p1230_p6 }
 0x333   : > { %1126 = dma.done.wait (!%p1037_p4), %s827_s11, 256  }
 0x334   : > { %1128 = vsyncadd (!%p1037_p4), %s827_s11, 4294967040  ;;  %p17_p5 = scmp.ge.s32.totalorder %s1213_s30, 4   ;;  %s1450_s24 = smov %s1135_s25 }
 0x335   : > { %s1451_s25 = smov %s1139_s26  ;;  %s1452_s26 = smov %s1224_s10 }
 0x336   : > { %s1453_s27 = smov %s1213_s30  ;;  %19 = sbr.rel (!%p17_p5) target bundleno = 3 (0x3), region = 83 }
 0x33d   :  { %832 = vsyncpa [#allocation3], 1 }
 0x33e   :  { %834 = vsyncpa [#allocation3 + $0x1], 1 }

</bundles_post_ra>
